<compile_context>
chip_gen: v7x
topology: tpu7x:2x2x1
jax: 0.10.0
libtpu: 0.0.40
codegen_flags: <defaults>
</compile_context>

<pallas_src>
import math

import jax
import jax.numpy as jnp
from jax import lax
from jax.experimental import pallas as pl
from jax.experimental.pallas import tpu as pltpu

KPAD = 8  # sublane-padded state-feature width: state in cols 0..2, eps in col 3
_HALF_LOG_2PI = 0.5 * math.log(2.0 * math.pi)


# ---------------------------------------------------------------------------
# Kernel
# ---------------------------------------------------------------------------
def make_actor_critic_kernel(kpad, nl):
    """Build the fused actor+critic kernel for a given padded lane width NL."""

    def kernel(x_ref, w_ref, b_ref, log_std_ref, out_ref):
        x = x_ref[...]                                 # [B, KPAD] f32

        # Static, sublane-aligned views into the packed weight/bias slabs.
        w1 = w_ref[0:kpad, :]                          # [KPAD, NL]
        w2 = w_ref[kpad:kpad + nl, :]                  # [NL, NL]  (block-diag actor/critic)
        w3 = w_ref[kpad + nl:kpad + 2 * nl, :]         # [NL, NL]  (only lanes 0 and 2 nonzero)
        b1 = b_ref[0:1, :]                             # [1, NL]
        b2 = b_ref[1:2, :]
        b3 = b_ref[2:3, :]

        # Fused actor+critic MLP: 3 lane-dense MXU matmuls instead of 6 narrow ones.
        h = jnp.tanh(jnp.dot(x, w1, preferred_element_type=jnp.float32) + b1)
        h = jnp.tanh(jnp.dot(h, w2, preferred_element_type=jnp.float32) + b2)
        y = jnp.dot(h, w3, preferred_element_type=jnp.float32) + b3   # [B, NL]
        # lane 0 = actor mean, lane 2 = critic value, remaining lanes = 0

        # Normal(mean, exp(log_std)): reparameterized sample + log_prob.
        log_std = log_std_ref[0, 0]                    # SMEM scalar
        std = jnp.exp(log_std)
        eps = x[:, 3:4]                                # [B, 1] standard-normal noise
        logp = -0.5 * eps * eps - log_std - _HALF_LOG_2PI   # [B, 1]

        lane = lax.broadcasted_iota(jnp.int32, y.shape, 1)
        out = jnp.where(lane == 0, y + std * eps,                          # action (lane 0)
              jnp.where(lane == 1, jnp.broadcast_to(logp, y.shape), y))    # log_prob / value
        out_ref[...] = out                              # single unmasked lane-dense store

    return kernel


# ---------------------------------------------------------------------------
# Parameter init (PyTorch-style) and one-time packing into kernel slabs
# ---------------------------------------------------------------------------
def _linear_init(key, fan_in, fan_out):
    """PyTorch nn.Linear default init: U(-1/sqrt(fan_in), 1/sqrt(fan_in))."""
    kw, kb = jax.random.split(key)
    bound = 1.0 / math.sqrt(fan_in)
    w = jax.random.uniform(kw, (fan_in, fan_out), jnp.float32, -bound, bound)
    b = jax.random.uniform(kb, (1, fan_out), jnp.float32, -bound, bound)
    return w, b


def init_params(key, hidden_size):
    keys = jax.random.split(key, 6)
    wa1, ba1 = _linear_init(keys[0], 3, hidden_size)
    wa2, ba2 = _linear_init(keys[1], hidden_size, hidden_size)
    wa3, ba3 = _linear_init(keys[2], hidden_size, 1)
    wc1, bc1 = _linear_init(keys[3], 3, hidden_size)
    wc2, bc2 = _linear_init(keys[4], hidden_size, hidden_size)
    wc3, bc3 = _linear_init(keys[5], hidden_size, 1)
    log_std = jnp.zeros((1, 1), jnp.float32)  # nn.Parameter(torch.tensor([[0.0]]))
    return dict(wa1=wa1, ba1=ba1, wa2=wa2, ba2=ba2, wa3=wa3, ba3=ba3,
                wc1=wc1, bc1=bc1, wc2=wc2, bc2=bc2, wc3=wc3, bc3=bc3,
                log_std=log_std)


def pack_params(params, hidden_size):
    """One-time packing of all weights/biases into two lane-dense slabs."""
    H = hidden_size
    nl = ((2 * H + 127) // 128) * 128  # lane-padded fused width (>= 128)
    f32 = jnp.float32

    # Layer 1: [KPAD, NL] — state rows 0..2 feed actor lanes [0,H) and critic lanes [H,2H).
    w1 = jnp.zeros((KPAD, nl), f32)
    w1 = w1.at[:3, :H].set(params["wa1"]).at[:3, H:2 * H].set(params["wc1"])
    # Layer 2: block-diagonal [NL, NL].
    w2 = jnp.zeros((nl, nl), f32)
    w2 = w2.at[:H, :H].set(params["wa2"]).at[H:2 * H, H:2 * H].set(params["wc2"])
    # Layer 3: actor mean -> lane 0, critic value -> lane 2.
    w3 = jnp.zeros((nl, nl), f32)
    w3 = w3.at[:H, 0:1].set(params["wa3"]).at[H:2 * H, 2:3].set(params["wc3"])
    wslab = jnp.concatenate([w1, w2, w3], axis=0)       # [KPAD + 2*NL, NL]

    bslab = jnp.zeros((8, nl), f32)
    bslab = bslab.at[0, :H].set(params["ba1"][0]).at[0, H:2 * H].set(params["bc1"][0])
    bslab = bslab.at[1, :H].set(params["ba2"][0]).at[1, H:2 * H].set(params["bc2"][0])
    bslab = bslab.at[2, 0].set(params["ba3"][0, 0]).at[2, 2].set(params["bc3"][0, 0])

    return dict(wslab=wslab, bslab=bslab, log_std=params["log_std"], nl=nl)


# ---------------------------------------------------------------------------
# Forward (per-step): 4 input operands, 1 lane-dense output
# ---------------------------------------------------------------------------
def actor_critic_forward(state, packed, sample_key):
    """state: [B, 3] f32 -> (action [B,1], {'log_prob': [B,1], 'value': [B]})."""
    B = state.shape[0]
    f32 = jnp.float32
    nl = packed["nl"]

    eps = jax.random.normal(sample_key, (B, 1), f32)
    x = jnp.zeros((B, KPAD), f32)
    x = x.at[:, :3].set(state.astype(f32))
    x = x.at[:, 3:4].set(eps)                           # noise rides in col 3

    kernel = make_actor_critic_kernel(KPAD, nl)
    vmem = pl.BlockSpec(memory_space=pltpu.MemorySpace.VMEM)
    smem = pl.BlockSpec(memory_space=pltpu.MemorySpace.SMEM)

    out = pl.pallas_call(
        kernel,
        out_shape=jax.ShapeDtypeStruct((B, nl), f32),
        in_specs=[vmem, vmem, vmem, smem],
        out_specs=vmem,
    )(x, packed["wslab"], packed["bslab"], packed["log_std"])

    action = out[:, 0:1]
    log_prob = out[:, 1:2]
    value = out[:, 2]        # Critic.forward: value.squeeze(dim=1) -> [B]
    return action, {"log_prob": log_prob, "value": value}


# ---------------------------------------------------------------------------
# Pure-JAX reference of the PyTorch forward (given the same noise eps)
# ---------------------------------------------------------------------------
def reference_forward(state, params, eps):
    def mlp(x, w1, b1, w2, b2, w3, b3):
        h = jnp.tanh(x @ w1 + b1)
        h = jnp.tanh(h @ w2 + b2)
        return h @ w3 + b3

    mean = mlp(state, params["wa1"], params["ba1"], params["wa2"], params["ba2"],
               params["wa3"], params["ba3"])
    value = mlp(state, params["wc1"], params["bc1"], params["wc2"], params["bc2"],
                params["wc3"], params["bc3"])[:, 0]
    log_std = params["log_std"][0, 0]
    std = jnp.exp(log_std)
    action = mean + std * eps
    log_prob = (-((action - mean) ** 2) / (2.0 * std * std)
                - log_std - 0.5 * jnp.log(2.0 * jnp.pi))
    return action, log_prob, value


if __name__ == "__main__":
    B = 8            # batch of states
    HIDDEN = 32      # hidden_size

    root = jax.random.PRNGKey(0)
    k_params, k_state, k_sample = jax.random.split(root, 3)

    params = init_params(k_params, HIDDEN)
    packed = pack_params(params, HIDDEN)   # hoisted: packing/padding done once
    state = jax.random.normal(k_state, (B, 3), jnp.float32)

    action, extras = actor_critic_forward(state, packed, k_sample)
    jax.block_until_ready((action, extras["log_prob"], extras["value"]))

    # Correctness check against a pure-JAX reference using the same noise.
    eps = jax.random.normal(k_sample, (B, 1), jnp.float32)
    ref_action, ref_logp, ref_value = reference_forward(state, params, eps)
    assert jnp.allclose(action, ref_action, atol=1e-5), "action mismatch"
    assert jnp.allclose(extras["log_prob"], ref_logp, atol=1e-5), "log_prob mismatch"
    assert jnp.allclose(extras["value"], ref_value, atol=1e-5), "value mismatch"
    assert action.shape == (B, 1)
    assert extras["log_prob"].shape == (B, 1)
    assert extras["value"].shape == (B,)

    print("KERNEL_OK")
</pallas_src>

<mosaic_0001>
module attributes {stable_mosaic.version = 11 : i64} {
  func.func @kernel(%arg0: memref<8x8xf32, #tpu.memory_space<vmem>>, %arg1: memref<264x128xf32, #tpu.memory_space<vmem>>, %arg2: memref<8x128xf32, #tpu.memory_space<vmem>>, %arg3: memref<1x1xf32, #tpu.memory_space<smem>>, %arg4: memref<8x128xf32, #tpu.memory_space<vmem>>) attributes {dimension_semantics = [], scalar_prefetch = 0 : i64, scratch_operands = 0 : i64, tpu.core_type = #tpu.core_type<tc>} {
    %c0 = arith.constant 0 : index
    %c0_0 = arith.constant 0 : index
    %0 = vector.load %arg0[%c0, %c0_0] : memref<8x8xf32, #tpu.memory_space<vmem>>, vector<8x8xf32>
    %c0_1 = arith.constant 0 : index
    %c0_2 = arith.constant 0 : index
    %1 = vector.load %arg1[%c0_1, %c0_2] : memref<264x128xf32, #tpu.memory_space<vmem>>, vector<8x128xf32>
    %c8 = arith.constant 8 : index
    %c0_3 = arith.constant 0 : index
    %2 = vector.load %arg1[%c8, %c0_3] : memref<264x128xf32, #tpu.memory_space<vmem>>, vector<128x128xf32>
    %c136 = arith.constant 136 : index
    %c0_4 = arith.constant 0 : index
    %3 = vector.load %arg1[%c136, %c0_4] : memref<264x128xf32, #tpu.memory_space<vmem>>, vector<128x128xf32>
    %c0_5 = arith.constant 0 : index
    %c0_6 = arith.constant 0 : index
    %4 = vector.load %arg2[%c0_5, %c0_6] : memref<8x128xf32, #tpu.memory_space<vmem>>, vector<1x128xf32>
    %c1 = arith.constant 1 : index
    %c0_7 = arith.constant 0 : index
    %5 = vector.load %arg2[%c1, %c0_7] : memref<8x128xf32, #tpu.memory_space<vmem>>, vector<1x128xf32>
    %c2 = arith.constant 2 : index
    %c0_8 = arith.constant 0 : index
    %6 = vector.load %arg2[%c2, %c0_8] : memref<8x128xf32, #tpu.memory_space<vmem>>, vector<1x128xf32>
    %cst = arith.constant dense<0.000000e+00> : vector<8x128xf32>
    %7 = tpu.matmul %0, %1, %cst {dimension_numbers = #tpu.dot_dimension_numbers<[1], [0], [0], [1], [0, 0, 1, 1], [], []>} : vector<8x8xf32>, vector<8x128xf32>, vector<8x128xf32> -> vector<8x128xf32>
    %8 = vector.broadcast %4 : vector<1x128xf32> to vector<8x128xf32>
    %9 = arith.addf %7, %8 : vector<8x128xf32>
    %10 = math.tanh %9 : vector<8x128xf32>
    %cst_9 = arith.constant dense<0.000000e+00> : vector<8x128xf32>
    %11 = tpu.matmul %10, %2, %cst_9 {dimension_numbers = #tpu.dot_dimension_numbers<[1], [0], [0], [1], [0, 0, 1, 1], [], []>} : vector<8x128xf32>, vector<128x128xf32>, vector<8x128xf32> -> vector<8x128xf32>
    %12 = vector.broadcast %5 : vector<1x128xf32> to vector<8x128xf32>
    %13 = arith.addf %11, %12 : vector<8x128xf32>
    %14 = math.tanh %13 : vector<8x128xf32>
    %cst_10 = arith.constant dense<0.000000e+00> : vector<8x128xf32>
    %15 = tpu.matmul %14, %3, %cst_10 {dimension_numbers = #tpu.dot_dimension_numbers<[1], [0], [0], [1], [0, 0, 1, 1], [], []>} : vector<8x128xf32>, vector<128x128xf32>, vector<8x128xf32> -> vector<8x128xf32>
    %16 = vector.broadcast %6 : vector<1x128xf32> to vector<8x128xf32>
    %17 = arith.addf %15, %16 : vector<8x128xf32>
    %c0_11 = arith.constant 0 : index
    %c0_12 = arith.constant 0 : index
    %18 = memref.load %arg3[%c0_11, %c0_12] : memref<1x1xf32, #tpu.memory_space<smem>>
    %19 = math.exp %18 : f32
    %20 = vector.extract_strided_slice %0 {offsets = [0, 3], sizes = [8, 1], strides = [1, 1]} : vector<8x8xf32> to vector<8x1xf32>
    %cst_13 = arith.constant -5.000000e-01 : f32
    %21 = vector.broadcast %cst_13 : f32 to vector<8x1xf32>
    %22 = arith.mulf %21, %20 : vector<8x1xf32>
    %23 = arith.mulf %22, %20 : vector<8x1xf32>
    %24 = vector.broadcast %18 : f32 to vector<8x1xf32>
    %25 = arith.subf %23, %24 : vector<8x1xf32>
    %cst_14 = arith.constant 0.918938517 : f32
    %26 = vector.broadcast %cst_14 : f32 to vector<8x1xf32>
    %27 = arith.subf %25, %26 : vector<8x1xf32>
    %28 = tpu.iota {dimensions = array<i32: 1>} : vector<8x128xi32>
    %c0_i32 = arith.constant 0 : i32
    %29 = vector.broadcast %c0_i32 : i32 to vector<8x128xi32>
    %30 = arith.cmpi eq, %28, %29 : vector<8x128xi32>
    %31 = vector.broadcast %19 : f32 to vector<8x1xf32>
    %32 = arith.mulf %31, %20 : vector<8x1xf32>
    %33 = vector.broadcast %32 : vector<8x1xf32> to vector<8x128xf32>
    %34 = arith.addf %17, %33 : vector<8x128xf32>
    %c1_i32 = arith.constant 1 : i32
    %35 = vector.broadcast %c1_i32 : i32 to vector<8x128xi32>
    %36 = arith.cmpi eq, %28, %35 : vector<8x128xi32>
    %37 = vector.shape_cast %27 : vector<8x1xf32> to vector<8x1xf32>
    %38 = vector.broadcast %37 : vector<8x1xf32> to vector<8x128xf32>
    %39 = arith.select %36, %38, %17 : vector<8x128xi1>, vector<8x128xf32>
    %40 = arith.select %30, %34, %39 : vector<8x128xi1>, vector<8x128xf32>
    %c0_15 = arith.constant 0 : index
    %c0_16 = arith.constant 0 : index
    %41 = vector.load %arg4[%c0_15, %c0_16] : memref<8x128xf32, #tpu.memory_space<vmem>>, vector<8x128xf32>
    tpu.vector_store %arg4[%c0_15, %c0_16], %40 {strides = array<i32>} : memref<8x128xf32, #tpu.memory_space<vmem>>, vector<8x128xf32>,
    return
  }
}

</mosaic_0001>

<bundles_post_ra>
// kernel: tpu_custom_call.1
= control target key start
LH: loop header
LB: loop body
LE: loop exit
PB: predicated region body
PF: predicated region fallthrough
CT: control target
= control target key end

     0   :  { %10 = vsyncpa [#allocation4], 0  ;;  %s724_s0 = inlined_call_operand.hbm [shape: f32[8,8], index: 0, kind: input, shape index: {}]   ;;  %s725_s1 = inlined_call_operand.hbm [shape: f32[264,128], index: 1, kind: input, shape index: {}]   ;;  %s726_s2 = inlined_call_operand.vmem [shape: f32[8,128], index: 2, kind: input, shape index: {}]   ;;  %s727_s3 = inlined_call_operand.<no memory space> [shape: f32[1,1], index: 3, kind: input, shape index: {}]   ;;  %s728_s4 = inlined_call_operand.hbm [shape: f32[8,128], index: 4, kind: output, shape index: {}]  }
   0x1   :  { %11 = vsyncpa [#allocation7], 0 }
   0x2   :  { %12 = vsyncpa [#allocation5], 0  ;;  %s610_s15 = smov [#allocation3]   ;;  %s611_s17 = smov [#allocation6]  }
   0x3   :  { %s19_s16 = sshll.u32 %s610_s15, 4  ;;  %s28_s18 = sshll.u32 %s611_s17, 4  ;;  %s20_s16 = int_to_ptr.vmem [resolvable:$true] %s19_s16  ;;  %s644_s18 = int_to_ptr.vmem [resolvable:$true] %s28_s18 }
   0x4   :  { %s538_s21 = scalar_lea.hbm %s724_s0, 128 }
   0x5   :  { %p539_p0 = scmp.ne.s32.totalorder %s724_s0, %s538_s21  ;;  %p542_p1 = scmp.lt.u32.totalorder %s538_s21, %s724_s0 }
   0x7   :  { %p544_p2 = pnand %p542_p1, %p539_p0 }
   0x9   :  { %547 = shalt.err (!%p544_p2)
}
   0xa   :  { %s548_s26 = scalar_lea.vmem %s20_s16, 128  ;;  %p553_p4 = scmp.lt.s32.totalorder %s20_s16, %s20_s16 }
   0xb   :  { %p549_p3 = scmp.ne.s32.totalorder %s20_s16, %s548_s26  ;;  %p554_p5 = scmp.lt.s32.totalorder %s548_s26, %s548_s26 }
   0xd   :  { %p555_p6 = por %p554_p5, %p553_p4 }
   0xf   :  { %p556_p7 = pnand %p555_p6, %p549_p3 }
  0x11   :  { %559 = shalt.err (!%p556_p7)
}
  0x12   :  { %22 = dma.hbm_to_vmem [thread:$0]  %s724_s0, 128, %s20_s16, [#allocation4]  }
  0x13   :  { %s560_s5 = scalar_lea.hbm %s725_s1, 4224 }
  0x14   :  { %p561_p8 = scmp.ne.s32.totalorder %s725_s1, %s560_s5  ;;  %p564_p9 = scmp.lt.u32.totalorder %s560_s5, %s725_s1 }
  0x16   :  { %p566_p10 = pnand %p564_p9, %p561_p8 }
  0x18   :  { %569 = shalt.err (!%p566_p10)
}
  0x19   :  { %s570_s10 = scalar_lea.vmem %s644_s18, 4224  ;;  %p575_p12 = scmp.lt.s32.totalorder %s644_s18, %s644_s18 }
  0x1a   :  { %p571_p11 = scmp.ne.s32.totalorder %s644_s18, %s570_s10  ;;  %p576_p13 = scmp.lt.s32.totalorder %s570_s10, %s570_s10 }
  0x1c   :  { %p577_p0 = por %p576_p13, %p575_p12 }
  0x1e   :  { %p578_p1 = pnand %p577_p0, %p571_p11 }
  0x20   :  { %581 = shalt.err (!%p578_p1)
}
  0x21   :  { %s612_s0 = smov 128   ;;  %s613_s11 = smov 8  }
  0x22   :  { %34 = dma.hbm_to_vmem [thread:$0]  %s725_s1, 4224, %s644_s18, [#allocation7], %s612_s0, %s612_s0, %s613_s11  }
  0x23   :  { %604 = dma.done.wait [#allocation4], 128  }
  0x24   :  { %605 = vsyncadd [#allocation4], 4294967168 }
  0x25   :  { %606 = dma.done.wait [#allocation7], 4224  }
  0x26   :  { %607 = vsyncadd [#allocation7], 4294963072  ;;  %v614_v0 = vmov 0.0   ;;  %vm615_vm0 = vmmov 0   ;;  %v616_v1 = vmov 0.0|0.0   ;;  %vm86_vm1 = vcmask 64512  }
  0x27   :  { %397 = vmatprep.subr.mxu0 %v614_v0  ;;  %399 = vmatprep.mubr.msk.f32.mxu0 %vm615_vm0, %v614_v0  ;;  %v46_v2 = vld [vmem:[#allocation6] sm:$0xff]  ;;  %v678_v3 = vld [vmem:[#allocation3] sm:$0xff]  ;;  %v47_v4 = vld [vmem:[#allocation6 + $0x8] sm:$0xff]  ;;  %v311_v57 = vstv %s727_s3  ;;  %v617_v59 = vmov 3   ;;  %s618_s21 = smov [#allocation8]  }
  0x28   :  { %472 = vmatprep.subr.bf16.mxu1 %v616_v1  ;;  %434 = vmatprep.mubr.msk.f32.mxu1 %vm615_vm0, %v614_v0  ;;  %v48_v5 = vld [vmem:[#allocation6 + $0x10] sm:$0xff]  ;;  %v49_v6 = vld [vmem:[#allocation6 + $0x18] sm:$0xff]  ;;  %v50_v7 = vld [vmem:[#allocation6 + $0x20] sm:$0xff]  ;;  %v312_v58 = vmul.f32 1.442695, %v311_v57  ;;  %v315_v61 = vmul.f32 -0.5, %v678_v3 }
  0x29   :  { %398 = vmatpush3.msra.mxu0 %v46_v2  ;;  %v473_v8 = vpack.c.bf16 %v48_v5, %v47_v4  ;;  %v476_v9 = vpack.c.bf16 %v50_v7, %v49_v6  ;;  %v51_v10 = vld [vmem:[#allocation6 + $0x28] sm:$0xff]  ;;  %v52_v11 = vld [vmem:[#allocation6 + $0x30] sm:$0xff]  ;;  %v53_v13 = vld [vmem:[#allocation6 + $0x38] sm:$0xff]  ;;  %531 = vset.pattern.permute.xlu0 %v617_v59  ;;  %s346_s22 = sshll.u32 %s618_s21, 4  ;;  %s347_s22 = int_to_ptr.vmem [resolvable:$true] %s346_s22 }
  0x2a   :  { %400 = vmatmul.mubr.msk.f32.vlgmr.msra.gmra.mrb[0].mxu0 %vm86_vm1, %v678_v3  ;;  %496 = vmatprep.subr.bf16.mxu0 %v616_v1  ;;  %v479_v12 = vpack.c.bf16 %v52_v11, %v51_v10  ;;  %v54_v14 = vld [vmem:[#allocation6 + $0x40] sm:$0xff]  ;;  %v55_v16 = vld [vmem:[#allocation6 + $0x48] sm:$0xff]  ;;  %v56_v17 = vld [vmem:[#allocation6 + $0x50] sm:$0xff]  ;;  %v316_v62 = vmul.f32 %v315_v61, %v678_v3  ;;  %s582_s23 = scalar_lea.vmem %s347_s22, 128  ;;  %p587_p3 = scmp.lt.s32.totalorder %s347_s22, %s347_s22 }
  0x2b   :  { %469 = vmatprep.mubr.msk.f32.mxu0 %vm615_vm0, %v614_v0  ;;  %474 = vmatpush3.bf16.msra.mxu1 %v473_v8  ;;  %v482_v15 = vpack.c.bf16 %v54_v14, %v53_v13  ;;  %v485_v18 = vpack.c.bf16 %v56_v17, %v55_v16  ;;  %v57_v19 = vld [vmem:[#allocation6 + $0x58] sm:$0xff]  ;;  %v58_v20 = vld [vmem:[#allocation6 + $0x60] sm:$0xff]  ;;  %v59_v22 = vld [vmem:[#allocation6 + $0x68] sm:$0xff]  ;;  %p583_p2 = scmp.ne.s32.totalorder %s347_s22, %s582_s23  ;;  %p588_p4 = scmp.lt.s32.totalorder %s582_s23, %s582_s23 }
  0x2c   :  { %475 = vmatprep.subr.bf16.mxu1 %v616_v1  ;;  %v488_v21 = vpack.c.bf16 %v58_v20, %v57_v19  ;;  %v60_v23 = vld [vmem:[#allocation6 + $0x70] sm:$0xff]  ;;  %v61_v25 = vld [vmem:[#allocation6 + $0x78] sm:$0xff]  ;;  %v62_v26 = vld [vmem:[#allocation6 + $0x80] sm:$0xff]  ;;  %v318_v63 = vsub.f32 %v316_v62, %v311_v57 }
  0x2d   :  { %v491_v24 = vpack.c.bf16 %v60_v23, %v59_v22  ;;  %v494_v27 = vpack.c.bf16 %v62_v26, %v61_v25  ;;  %v63_v28 = vld [vmem:[#allocation6 + $0x88] sm:$0xff]  ;;  %v64_v29 = vld [vmem:[#allocation6 + $0x90] sm:$0xff]  ;;  %v65_v30 = vld [vmem:[#allocation6 + $0x98] sm:$0xff]  ;;  %p589_p5 = por %p588_p4, %p587_p3 }
  0x2e   :  { %v497_v31 = vpack.c.bf16 %v64_v29, %v63_v28  ;;  %v66_v32 = vld [vmem:[#allocation6 + $0xa0] sm:$0xff]  ;;  %v67_v34 = vld [vmem:[#allocation6 + $0xa8] sm:$0xff]  ;;  %v68_v35 = vld [vmem:[#allocation6 + $0xb0] sm:$0xff]  ;;  %v360_v2 = vadd.f32 -0.9189385, %v318_v63 }
  0x2f   :  { %477 = vmatpush3.bf16.msra.mxu1 %v476_v9  ;;  %v500_v33 = vpack.c.bf16 %v66_v32, %v65_v30  ;;  %v503_v36 = vpack.c.bf16 %v68_v35, %v67_v34  ;;  %v69_v37 = vld [vmem:[#allocation6 + $0xb8] sm:$0xff]  ;;  %v70_v38 = vld [vmem:[#allocation6 + $0xc0] sm:$0xff]  ;;  %v71_v40 = vld [vmem:[#allocation6 + $0xc8] sm:$0xff]  ;;  %v320_v9 = vlaneseq  ;;  %p590_p6 = pnand %p589_p5, %p583_p2 }
  0x30   :  { %478 = vmatprep.subr.bf16.mxu1 %v616_v1  ;;  %498 = vmatpush3.bf16.msra.mxu0 %v497_v31  ;;  %v506_v39 = vpack.c.bf16 %v70_v38, %v69_v37  ;;  %v72_v41 = vld [vmem:[#allocation6 + $0xd0] sm:$0xff]  ;;  %v356_v43 = vld [vmem:[%s726_s2] ss:$0 sm:$0xff]  ;;  %v74_v49 = vld [vmem:[#allocation6 + $0xe0] sm:$0xff] }
  0x31   :  { %499 = vmatprep.subr.bf16.mxu0 %v616_v1  ;;  %v509_v42 = vpack.c.bf16 %v72_v41, %v71_v40  ;;  %v73_v48 = vld [vmem:[#allocation6 + $0xd8] sm:$0xff]  ;;  %v75_v51 = vld [vmem:[#allocation6 + $0xe8] sm:$0xff]  ;;  %v76_v52 = vld [vmem:[#allocation6 + $0xf0] sm:$0xff]  ;;  %v321_v11 = vand.u32 127, %v320_v9 }
  0x32   :  { %v512_v50 = vpack.c.bf16 %v74_v49, %v73_v48  ;;  %v515_v53 = vpack.c.bf16 %v76_v52, %v75_v51  ;;  %v77_v54 = vld [vmem:[#allocation6 + $0xf8] sm:$0xff]  ;;  %v78_v55 = vld [vmem:[#allocation6 + $0x100] sm:$0xff] }
  0x33   :  { %480 = vmatpush3.bf16.msra.mxu1 %v479_v12  ;;  %v518_v56 = vpack.c.bf16 %v78_v55, %v77_v54  ;;  %v358_v4 = vld [vmem:[%s726_s2 + $0x1] ss:$0 sm:$0xff]  ;;  %vm331_vm2 = vcmp.eq.s32.totalorder %v321_v11, 1  ;;  %vm322_vm3 = vcmp.eq.s32.totalorder %v321_v11, 0 }
  0x34   :  { %481 = vmatprep.subr.bf16.mxu1 %v616_v1  ;;  %501 = vmatpush3.bf16.msra.mxu0 %v500_v33 }
  0x35   :  { %502 = vmatprep.subr.bf16.mxu0 %v616_v1 }
  0x37   :  { %483 = vmatpush3.bf16.msra.mxu1 %v482_v15 }
  0x38   :  { %484 = vmatprep.subr.bf16.mxu1 %v616_v1  ;;  %504 = vmatpush3.bf16.msra.mxu0 %v503_v36 }
  0x39   :  { %505 = vmatprep.subr.bf16.mxu0 %v616_v1 }
  0x3b   :  { %486 = vmatpush3.bf16.msra.mxu1 %v485_v18 }
  0x3c   :  { %487 = vmatprep.subr.bf16.mxu1 %v616_v1  ;;  %507 = vmatpush3.bf16.msra.mxu0 %v506_v39 }
  0x3d   :  { %508 = vmatprep.subr.bf16.mxu0 %v616_v1 }
  0x3f   :  { %489 = vmatpush3.bf16.msra.mxu1 %v488_v21 }
  0x40   :  { %490 = vmatprep.subr.bf16.mxu1 %v616_v1  ;;  %510 = vmatpush3.bf16.msra.mxu0 %v509_v42 }
  0x41   :  { %511 = vmatprep.subr.bf16.mxu0 %v616_v1 }
  0x43   :  { %492 = vmatpush3.bf16.msra.mxu1 %v491_v24 }
  0x44   :  { %493 = vmatprep.subr.bf16.mxu1 %v616_v1  ;;  %513 = vmatpush3.bf16.msra.mxu0 %v512_v50 }
  0x45   :  { %514 = vmatprep.subr.bf16.mxu0 %v616_v1 }
  0x47   :  { %495 = vmatpush3.bf16.msra.mxu1 %v494_v27 }
  0x48   :  { %516 = vmatpush3.bf16.msra.mxu0 %v515_v53 }
  0x49   :  { %517 = vmatprep.subr.bf16.mxu0 %v616_v1 }
  0x4c   :  { %519 = vmatpush3.bf16.msra.mxu0 %v518_v56 }
  0xfd   :  { %v156_v44 = vpop.f32.mrb[0].mxu0 }
  0xfe   :  { %v157_v45 = vadd.f32 %v356_v43, %v156_v44  ;;  %v401_v46 = vpop.f32.mrb[1].mxu0 }
 0x100   :  { %532 = vtanh.f32 %v157_v45 }
 0x101   :  { %534 = vpow2.f32 %v312_v58 }
 0x10a   :  { %v533_v47 = vpop.eup %532 }
 0x10b   :  { %435 = vmatmul.mubr.f32.vlgmr.msra.gmra.mrb[0].mxu1 %v533_v47  ;;  %v535_v60 = vpop.eup %534 }
 0x10c   :  { %520 = vpush %v535_v60 }
 0x13d   :  { %s521_s17 = spop %520 }
 0x13e   :  { %v323_v0 = vstv %s521_s17 }
 0x13f   :  { %v324_v1 = vmul.f32 %v323_v0, %v678_v3  ;;  %v359_v3 = vld [vmem:[%s726_s2 + $0x2] ss:$0 sm:$0xff] }
 0x141   :  { %327 = vperm.xlu0 %531, %v324_v1  }
 0x145   :  { %334 = vperm.xlu0 %531, %v360_v2  }
 0x1c0   :  { %v328_v10 = vpop.permute.xlu0 %327 }
 0x1c4   :  { %v335_v15 = vpop.permute.xlu0 %334 }
 0x1de   :  { %v231_v5 = vpop.f32.mrb[0].mxu1 }
 0x1df   :  { %v232_v6 = vadd.f32 %v358_v4, %v231_v5  ;;  %v436_v7 = vpop.f32.mrb[1].mxu1 }
 0x1e1   :  { %536 = vtanh.f32 %v232_v6 }
 0x1eb   :  { %v537_v8 = vpop.eup %536 }
 0x1ec   :  { %470 = vmatmul.mubr.f32.vlgmr.msra.gmra.mrb[2].mxu0 %v537_v8 }
 0x2bf   :  { %v306_v12 = vpop.f32.mrb[2].mxu0 }
 0x2c0   :  { %v307_v13 = vadd.f32 %v359_v3, %v306_v12  ;;  %v471_v14 = vpop.f32.mrb[3].mxu0 }
 0x2c2   :  { %v330_v16 = vadd.f32 %v328_v10, %v307_v13  ;;  %v337_v17 = vsel %vm331_vm2, %v335_v15, %v307_v13 }
 0x2c4   :  { %v338_v18 = vsel %vm322_vm3, %v330_v16, %v337_v17 }
 0x2c5   :  { %339 = vst [vmem:[#allocation8] sm:$0xff] %v338_v18 }
 0x2c6   :  { %593 = shalt.err (!%p590_p6)
}
 0x2c7   :  { %s594_s25 = scalar_lea.hbm %s728_s4, 128 }
 0x2c8   :  { %p595_p7 = scmp.ne.s32.totalorder %s728_s4, %s594_s25  ;;  %p598_p8 = scmp.lt.u32.totalorder %s594_s25, %s728_s4 }
 0x2ca   :  { %p600_p9 = pnand %p598_p8, %p595_p7 }
 0x2cc   :  { %603 = shalt.err (!%p600_p9)
}
 0x2cd   :  { %349 = dma.vmem_to_hbm [thread:$0]  %s347_s22, 128, %s728_s4, [#allocation5]  }
 0x2ce   :  { %608 = dma.done.wait [#allocation5], 128  }
 0x2cf   :  { %609 = vsyncadd [#allocation5], 4294967168 }
 0x2d0   :  { %353 = vsyncpa [#allocation4], 1 }
 0x2d1   :  { %354 = vsyncpa [#allocation7], 1 }
 0x2d2   :  { %355 = vsyncpa [#allocation5], 1 }

</bundles_post_ra>
